<compile_context>
chip_gen: v6e
topology: v6e:2x2x1
jax: 0.10.0
libtpu: 0.0.40
codegen_flags: <defaults>
</compile_context>

<pallas_src>
import math

import jax
import jax.numpy as jnp
from jax.experimental import pallas as pl
from jax.experimental.pallas import tpu as pltpu

_LANES = 128


def _round_up(x, m):
    return -(-x // m) * m


def _dwa_kernel(w_ref, *refs):
    """refs = (rep_0, ..., rep_{K-1}, out).  out = sum_k w[k] * rep_k (f32 acc)."""
    o_ref = refs[-1]
    rep_refs = refs[:-1]
    # f32 accumulation regardless of input dtype; single downcast at the end.
    # (v7x note: with bf16 inputs and large K the cast+mul+add chain can start
    #  to bind on VALU; if a bundle dump shows vmul/vadd binding, do the per-k
    #  multiply in bf16 and keep only the accumulate in f32.)
    acc = w_ref[0] * rep_refs[0][...].astype(jnp.float32)
    for k in range(1, len(rep_refs)):            # K is static -> fully unrolled
        acc = acc + w_ref[k] * rep_refs[k][...].astype(jnp.float32)
    o_ref[...] = acc.astype(o_ref.dtype)


def dwa_weighted_sum(weights, reps):
    """out = sum_k weights[k] * reps[k] over identically-shaped arrays."""
    K = len(reps)
    assert K >= 1 and weights.shape == (K,)
    shape = reps[0].shape
    out_dtype = reps[0].dtype
    itemsize = jnp.dtype(out_dtype).itemsize
    total = math.prod(shape)

    # ---- copy-free 2D view (no jnp.pad, no output slice) -------------------
    if total % _LANES == 0:
        cols = _LANES                      # lane-dense, unmasked vst
    else:
        cols = shape[-1]                   # full last dim as block last dim
    rows = total // cols
    reps2d = [r.reshape(rows, cols) for r in reps]

    # ---- per-generation VMEM budget -> row-tile size ------------------------
    try:
        vmem_cap = pltpu.get_tpu_info().vmem_capacity_bytes
    except Exception:                      # pragma: no cover - conservative fallback
        vmem_cap = 64 << 20                # v7x per-TensorCore VMEM
    pipeline_budget = (2 * vmem_cap) // 5  # ~40% of physical for pipelined buffers

    row_bytes = cols * itemsize
    # (K inputs + 1 output) double-buffered + ~2 f32 per-row temporaries.
    bytes_per_row_step = 2 * (K + 1) * row_bytes + 2 * cols * 4
    tm = pipeline_budget // bytes_per_row_step
    tile_cap = max(8, (2 << 20) // row_bytes)          # ~2 MiB per block is enough
    tm = max(8, (min(tm, tile_cap) // 8) * 8)

    if rows < 16:
        tm = rows                                      # one block == full array dims
    else:
        # >= 2 grid steps so both v7x TensorCores get work (no-op cost on v5e/v6e).
        tm = max(8, min(tm, _round_up(-(-rows // 2), 8)))
    grid = -(-rows // tm)                              # ragged last tile handled by Pallas

    vmem_needed = 2 * (K + 1) * tm * row_bytes + 4 * tm * cols * 4 + (2 << 20)
    vmem_limit = min(int(vmem_cap * 0.75), max(vmem_needed, 32 << 20))

    weights = weights.astype(jnp.float32)              # keep alphas full precision

    out2d = pl.pallas_call(
        _dwa_kernel,
        out_shape=jax.ShapeDtypeStruct((rows, cols), out_dtype),
        grid_spec=pltpu.PrefetchScalarGridSpec(
            num_scalar_prefetch=1,                     # weights -> SMEM
            grid=(grid,),                              # spatial row tiles only
            in_specs=[
                pl.BlockSpec((tm, cols), lambda i, w: (i, 0))
                for _ in range(K)
            ],
            out_specs=pl.BlockSpec((tm, cols), lambda i, w: (i, 0)),
        ),
        compiler_params=pltpu.CompilerParams(
            dimension_semantics=("parallel",),         # megacore-shard rows on v7x
            vmem_limit_bytes=vmem_limit,
        ),
        cost_estimate=pl.CostEstimate(
            flops=2 * K * total,
            transcendentals=0,
            bytes_accessed=(K + 1) * total * itemsize,  # K reads + 1 write
        ),
    )(weights, *reps2d)

    return out2d.reshape(shape)


def dwa_block_forward(x, dwa_mat, past_reps, current_block_num, dilation_factor=1):
    """JAX equivalent of DWA_Block.forward.

    x:          (B, N, D)
    dwa_mat:    (num_blocks, num_blocks)
    past_reps:  python list of (B, N, D) arrays, indexed by block number
    returns (out, dwa_mat) just like the PyTorch module.
    """
    selected = [p for p in range(current_block_num) if p % dilation_factor == 0]

    # weights[0] = alpha_self, weights[1:] = alphas for selected past blocks.
    # If no past reps are selected (current_block_num == 0) fall back to
    # out = alpha_self * x instead of asserting.
    weights = jnp.stack(
        [dwa_mat[current_block_num, current_block_num]]
        + [dwa_mat[current_block_num, p] for p in selected]
    )
    reps = [x] + [past_reps[p] for p in selected]

    out = dwa_weighted_sum(weights, reps)
    return out, dwa_mat


def _reference(x, dwa_mat, past_reps, current_block_num, dilation_factor):
    ref = dwa_mat[current_block_num, current_block_num] * x
    for p in range(current_block_num):
        if p % dilation_factor == 0:
            ref = ref + dwa_mat[current_block_num, p] * past_reps[p]
    return ref


if __name__ == "__main__":
    key = jax.random.PRNGKey(0)

    # --- test 1: small ViT-ish shapes, dilation 2 ---------------------------
    B, N, D = 2, 8, 32
    num_blocks = 6
    current_block_num = 4
    dilation_factor = 2        # -> uses past blocks 0 and 2

    k_x, k_mat, *k_reps = jax.random.split(key, 2 + current_block_num)
    x = jax.random.normal(k_x, (B, N, D), dtype=jnp.float32)
    dwa_mat = jax.random.normal(k_mat, (num_blocks, num_blocks), dtype=jnp.float32)
    past_reps = [
        jax.random.normal(k_reps[i], (B, N, D), dtype=jnp.float32)
        for i in range(current_block_num)
    ]

    out, mat_out = dwa_block_forward(x, dwa_mat, past_reps, current_block_num, dilation_factor)
    out = jax.block_until_ready(out)
    ref = _reference(x, dwa_mat, past_reps, current_block_num, dilation_factor)
    assert jnp.allclose(out, ref, atol=1e-5, rtol=1e-5), "mismatch vs reference (test 1)"
    assert out.shape == x.shape and mat_out.shape == dwa_mat.shape

    # --- test 2: lane-aligned multi-tile path (>= 2 grid steps) -------------
    k2 = jax.random.PRNGKey(1)
    k_x2, k_a2, k_b2 = jax.random.split(k2, 3)
    x2 = jax.random.normal(k_x2, (2, 64, 128), dtype=jnp.float32)
    pr2 = [jax.random.normal(k_a2, x2.shape, jnp.float32),
           jax.random.normal(k_b2, x2.shape, jnp.float32)]
    out2, _ = dwa_block_forward(x2, dwa_mat, pr2, current_block_num=2, dilation_factor=1)
    out2 = jax.block_until_ready(out2)
    ref2 = _reference(x2, dwa_mat, pr2, 2, 1)
    assert jnp.allclose(out2, ref2, atol=1e-5, rtol=1e-5), "mismatch vs reference (test 2)"

    # --- test 3: ragged last row-tile (rows not a multiple of the tile) -----
    k3 = jax.random.PRNGKey(2)
    k_x3, k_a3 = jax.random.split(k3, 2)
    x3 = jax.random.normal(k_x3, (1, 9, 384), dtype=jnp.float32)   # rows = 27
    pr3 = [jax.random.normal(k_a3, x3.shape, jnp.float32)]
    out3, _ = dwa_block_forward(x3, dwa_mat, pr3, current_block_num=1, dilation_factor=1)
    out3 = jax.block_until_ready(out3)
    ref3 = _reference(x3, dwa_mat, pr3, 1, 1)
    assert jnp.allclose(out3, ref3, atol=1e-5, rtol=1e-5), "mismatch vs reference (test 3)"

    # --- test 4: first block (no past reps) -> self term only ---------------
    out4, _ = dwa_block_forward(x, dwa_mat, [], current_block_num=0, dilation_factor=1)
    out4 = jax.block_until_ready(out4)
    assert jnp.allclose(out4, dwa_mat[0, 0] * x, atol=1e-5, rtol=1e-5), "mismatch (test 4)"

    print("KERNEL_OK")
</pallas_src>

<mosaic_0001>
module attributes {stable_mosaic.version = 11 : i64} {
  func.func @_dwa_kernel(%arg0: i32, %arg1: memref<3xf32, #tpu.memory_space<smem>>, %arg2: memref<4x128xf32, #tpu.memory_space<vmem>>, %arg3: memref<4x128xf32, #tpu.memory_space<vmem>>, %arg4: memref<4x128xf32, #tpu.memory_space<vmem>>, %arg5: memref<4x128xf32, #tpu.memory_space<vmem>>) attributes {dimension_semantics = [#tpu.dimension_semantics<parallel>], iteration_bounds = array<i64: 1>, scalar_prefetch = 1 : i64, scratch_operands = 0 : i64, tpu.core_type = #tpu.core_type<tc>, window_params = [{transform_indices = @transform_0, window_bounds = array<i64: 4, 128>}, {transform_indices = @transform_1, window_bounds = array<i64: 4, 128>}, {transform_indices = @transform_2, window_bounds = array<i64: 4, 128>}, {transform_indices = @transform_3, window_bounds = array<i64: 4, 128>}]} {
    %c0 = arith.constant 0 : index
    %0 = memref.load %arg1[%c0] : memref<3xf32, #tpu.memory_space<smem>>
    %c0_0 = arith.constant 0 : index
    %c0_1 = arith.constant 0 : index
    %1 = vector.load %arg2[%c0_0, %c0_1] : memref<4x128xf32, #tpu.memory_space<vmem>>, vector<4x128xf32>
    %2 = vector.broadcast %0 : f32 to vector<4x128xf32>
    %3 = arith.mulf %2, %1 : vector<4x128xf32>
    %c1 = arith.constant 1 : index
    %4 = memref.load %arg1[%c1] : memref<3xf32, #tpu.memory_space<smem>>
    %c0_2 = arith.constant 0 : index
    %c0_3 = arith.constant 0 : index
    %5 = vector.load %arg3[%c0_2, %c0_3] : memref<4x128xf32, #tpu.memory_space<vmem>>, vector<4x128xf32>
    %6 = vector.broadcast %4 : f32 to vector<4x128xf32>
    %7 = arith.mulf %6, %5 : vector<4x128xf32>
    %8 = arith.addf %3, %7 : vector<4x128xf32>
    %c2 = arith.constant 2 : index
    %9 = memref.load %arg1[%c2] : memref<3xf32, #tpu.memory_space<smem>>
    %c0_4 = arith.constant 0 : index
    %c0_5 = arith.constant 0 : index
    %10 = vector.load %arg4[%c0_4, %c0_5] : memref<4x128xf32, #tpu.memory_space<vmem>>, vector<4x128xf32>
    %11 = vector.broadcast %9 : f32 to vector<4x128xf32>
    %12 = arith.mulf %11, %10 : vector<4x128xf32>
    %13 = arith.addf %8, %12 : vector<4x128xf32>
    %c0_6 = arith.constant 0 : index
    %c0_7 = arith.constant 0 : index
    %14 = vector.load %arg5[%c0_6, %c0_7] : memref<4x128xf32, #tpu.memory_space<vmem>>, vector<4x128xf32>
    tpu.vector_store %arg5[%c0_6, %c0_7], %13 {strides = array<i32>} : memref<4x128xf32, #tpu.memory_space<vmem>>, vector<4x128xf32>,
    return
  }
  func.func @transform_0(%arg0: i32, %arg1: memref<3xf32, #tpu.memory_space<smem>>) -> (i32, i32) {
    %c0_i32 = arith.constant 0 : i32
    %c0_i32_0 = arith.constant 0 : i32
    return %arg0, %c0_i32 : i32, i32
  }
  func.func @transform_1(%arg0: i32, %arg1: memref<3xf32, #tpu.memory_space<smem>>) -> (i32, i32) {
    %c0_i32 = arith.constant 0 : i32
    %c0_i32_0 = arith.constant 0 : i32
    return %arg0, %c0_i32 : i32, i32
  }
  func.func @transform_2(%arg0: i32, %arg1: memref<3xf32, #tpu.memory_space<smem>>) -> (i32, i32) {
    %c0_i32 = arith.constant 0 : i32
    %c0_i32_0 = arith.constant 0 : i32
    return %arg0, %c0_i32 : i32, i32
  }
  func.func @transform_3(%arg0: i32, %arg1: memref<3xf32, #tpu.memory_space<smem>>) -> (i32, i32) {
    %c0_i32 = arith.constant 0 : i32
    %c0_i32_0 = arith.constant 0 : i32
    return %arg0, %c0_i32 : i32, i32
  }
}

</mosaic_0001>

<bundles_post_ra>
// kernel: tpu_custom_call.1
= control target key start
LH: loop header
LB: loop body
LE: loop exit
PB: predicated region body
PF: predicated region fallthrough
CT: control target
= control target key end

     0   :  { %s157_s15 = smov [#allocation3]   ;;  %s201_s0 = inlined_call_operand.hbm [shape: f32[3], index: 0, kind: input, shape index: {}]   ;;  %s202_s1 = inlined_call_operand.hbm [shape: f32[4,128], index: 1, kind: input, shape index: {}]   ;;  %s203_s2 = inlined_call_operand.hbm [shape: f32[4,128], index: 2, kind: input, shape index: {}]   ;;  %s204_s3 = inlined_call_operand.vmem [shape: f32[4,128], index: 3, kind: input, shape index: {}]   ;;  %s205_s4 = inlined_call_operand.hbm [shape: f32[4,128], index: 4, kind: output, shape index: {}]  }
   0x1   :  { %10 = dma.hbm_to_smem %s201_s0, 16, %s157_s15, [#allocation2] }
   0x2   :  { %149 = dma.done.wait [#allocation2], 16 }
   0x3   :  { %150 = vsyncadd [#allocation2], 4294967280 }
   0x4   :  { %12 = sfence }
   0x5   :  { %13 = vsyncpa [#allocation5], 0 }
   0x6   :  { %14 = vsyncpa [#allocation8], 0 }
   0x7   :  { %15 = vsyncpa [#allocation6], 0  ;;  %s158_s18 = smov [#allocation4]   ;;  %s159_s20 = smov [#allocation7]  }
   0x8   :  { %s22_s19 = sshll.u32 %s158_s18, 4  ;;  %s32_s21 = sshll.u32 %s159_s20, 4  ;;  %s23_s19 = int_to_ptr.vmem [resolvable:$true] %s22_s19  ;;  %s33_s21 = int_to_ptr.vmem [resolvable:$true] %s32_s21 }
   0x9   :  { %s97_s22 = scalar_lea.vmem %s23_s19, 64  ;;  %p102_p1 = scmp.lt.s32.totalorder %s23_s19, %s23_s19 }
   0xa   :  { %p98_p0 = scmp.ne.s32.totalorder %s23_s19, %s97_s22  ;;  %p103_p2 = scmp.lt.s32.totalorder %s97_s22, %s97_s22 }
   0xc   :  { %p104_p3 = por %p103_p2, %p102_p1 }
   0xe   :  { %p105_p4 = pnand %p104_p3, %p98_p0 }
  0x10   :  { %108 = shalt.err (!%p105_p4)
}
  0x11   :  { %25 = dma.hbm_to_vmem [thread:$0]  %s202_s1, 64, %s23_s19, [#allocation5]  }
  0x12   :  { %s117_s24 = scalar_lea.vmem %s33_s21, 64  ;;  %p122_p6 = scmp.lt.s32.totalorder %s33_s21, %s33_s21 }
  0x13   :  { %p118_p5 = scmp.ne.s32.totalorder %s33_s21, %s117_s24  ;;  %p123_p7 = scmp.lt.s32.totalorder %s117_s24, %s117_s24 }
  0x15   :  { %p124_p8 = por %p123_p7, %p122_p6 }
  0x17   :  { %p125_p9 = pnand %p124_p8, %p118_p5 }
  0x19   :  { %128 = shalt.err (!%p125_p9)
}
  0x1a   :  { %35 = dma.hbm_to_vmem [thread:$0]  %s203_s2, 64, %s33_s21, [#allocation8]  }
  0x1b   :  { %151 = dma.done.wait [#allocation5], 64  }
  0x1c   :  { %152 = vsyncadd [#allocation5], 4294967232 }
  0x1d   :  { %153 = dma.done.wait [#allocation8], 64  }
  0x1e   :  { %154 = vsyncadd [#allocation8], 4294967232  ;;  %s44_s27 = sld [smem:[#allocation3]]  ;;  %v45_v0 = vld [vmem:[#allocation4] sm:$0xf]  ;;  %s160_s2 = smov [#allocation9]  }
  0x1f   :  { %s75_s28 = sld [smem:[#allocation3 + $0x1]]  ;;  %v49_v2 = vld [vmem:[#allocation7] sm:$0xf]  ;;  %v54_v3 = vld [vmem:[%s204_s3] sm:$0xf]  ;;  %s65_s5 = sshll.u32 %s160_s2, 4  ;;  %s66_s5 = int_to_ptr.vmem [resolvable:$true] %s65_s5 }
  0x20   :  { %s76_s29 = sld [smem:[#allocation3 + $0x2]]  ;;  %s129_s6 = scalar_lea.vmem %s66_s5, 64 }
  0x21   :  { %p130_p10 = scmp.ne.s32.totalorder %s66_s5, %s129_s6  ;;  %p134_p11 = scmp.lt.s32.totalorder %s66_s5, %s66_s5 }
  0x22   :  { %p135_p12 = scmp.lt.s32.totalorder %s129_s6, %s129_s6 }
  0x24   :  { %v46_v1 = vstv %s44_s27  ;;  %p136_p13 = por %p135_p12, %p134_p11 }
  0x25   :  { %v47_v4 = vmul.f32 %v46_v1, %v45_v0  ;;  %v50_v5 = vstv %s75_s28 }
  0x26   :  { %v51_v6 = vmul.f32 %v50_v5, %v49_v2  ;;  %v55_v7 = vstv %s76_s29  ;;  %p137_p0 = pnand %p136_p13, %p130_p10 }
  0x27   :  { %v56_v8 = vmul.f32 %v55_v7, %v54_v3 }
  0x28   :  { %v52_v9 = vadd.f32 %v51_v6, %v47_v4 }
  0x2a   :  { %v57_v10 = vadd.f32 %v56_v8, %v52_v9 }
  0x2c   :  { %58 = vst [vmem:[#allocation9] sm:$0xf] %v57_v10 }
  0x2d   :  { %140 = shalt.err (!%p137_p0)
}
  0x2e   :  { %68 = dma.vmem_to_hbm [thread:$0]  %s66_s5, 64, %s205_s4, [#allocation6]  }
  0x2f   :  { %155 = dma.done.wait [#allocation6], 64  }
  0x30   :  { %156 = vsyncadd [#allocation6], 4294967232 }
  0x31   :  { %72 = vsyncpa [#allocation5], 1 }
  0x32   :  { %73 = vsyncpa [#allocation8], 1 }
  0x33   :  { %74 = vsyncpa [#allocation6], 1 }

</bundles_post_ra>
